<compile_context>
chip_gen: v7x
topology: tpu7x:2x2x1
jax: 0.10.0
libtpu: 0.0.40
codegen_flags: <defaults>
</compile_context>

<pallas_src>
import functools
import math

import jax
import jax.numpy as jnp
from jax.experimental import pallas as pl
from jax.experimental.pallas import tpu as pltpu

F32 = jnp.float32
BF16 = jnp.bfloat16


# ----------------------------------------------------------------------------
# In-kernel math helpers
# ----------------------------------------------------------------------------

def _expmap0(x, c):
    sc = c ** 0.5
    norm = jnp.maximum(jnp.sqrt(jnp.sum(x * x, axis=-1, keepdims=True)), 1e-15)
    y = jnp.tanh(sc * norm) * x / (sc * norm)
    yn = jnp.maximum(jnp.sqrt(jnp.sum(y * y, axis=-1, keepdims=True)), 1e-15)
    maxnorm = (1.0 - 1e-5) / sc
    return jnp.where(yn > maxnorm, y / yn * maxnorm, y)


def _logmap0(x, c):
    sc = c ** 0.5
    norm = jnp.maximum(jnp.sqrt(jnp.sum(x * x, axis=-1, keepdims=True)), 1e-15)
    arg = jnp.clip(sc * norm, -1.0 + 1e-7, 1.0 - 1e-7)
    atanh = 0.5 * jnp.log((1.0 + arg) / (1.0 - arg))
    return atanh * x / (sc * norm)


def _mobius_add(x, y, c):
    x2 = jnp.sum(x * x, axis=-1, keepdims=True)
    y2 = jnp.sum(y * y, axis=-1, keepdims=True)
    xy = jnp.sum(x * y, axis=-1, keepdims=True)
    num = (1.0 + 2.0 * c * xy + c * y2) * x + (1.0 - c * x2) * y
    den = 1.0 + 2.0 * c * xy + c * c * x2 * y2
    out = num / jnp.maximum(den, 1e-15)
    n = jnp.maximum(jnp.sqrt(jnp.sum(out * out, axis=-1, keepdims=True)), 1e-15)
    maxnorm = (1.0 - 1e-5) / (c ** 0.5)
    return jnp.where(n > maxnorm, out / n * maxnorm, out)


def _layernorm(x, g, b, eps):
    mu = jnp.mean(x, axis=-1, keepdims=True)
    var = jnp.mean((x - mu) ** 2, axis=-1, keepdims=True)
    return (x - mu) * jax.lax.rsqrt(var + eps) * g + b


def _mm(a, b):
    """MXU matmul: bf16 operands, f32 accumulation (casts are no-ops if already bf16)."""
    return jnp.dot(a.astype(BF16), b.astype(BF16), preferred_element_type=F32)


# ----------------------------------------------------------------------------
# Pallas kernels
# ----------------------------------------------------------------------------

def _edge_prep_kernel(ea_ref, we_ref, be_ref, weall_ref, o_ref):
    # embedding_e followed by ALL layers' E-projections (WE weights concatenated on lanes).
    e = jnp.dot(ea_ref[...], we_ref[...], preferred_element_type=F32) + be_ref[...]
    o_ref[...] = _mm(e, weall_ref[...])


def _pe_chain_kernel(pos_ref, h_ref, adj_ref, wp_ref, bp_ref, wpe_ref, bpe_ref, o_ref, *, c):
    # TODO(synk): exact PositionalEncoding (hyperbolic GNN encoder) source is unavailable;
    # approximated as a 1-layer hyperbolic GCN (tangent-space linear + normalized-adjacency
    # aggregation + ReLU), then mobius-added into the node features.
    p_feat = jnp.dot(pos_ref[...], wp_ref[...], preferred_element_type=F32) + bp_ref[...]
    x_tan = _logmap0(_expmap0(p_feat, c), c)
    t = jnp.dot(x_tan, wpe_ref[...], preferred_element_type=F32) + bpe_ref[...]
    agg = jnp.dot(adj_ref[...], t, preferred_element_type=F32)   # keep f32 (normalized adj)
    p_hyp = _expmap0(jnp.maximum(agg, 0.0), c)
    h_hyp = _expmap0(h_ref[...], c)
    o_ref[...] = _logmap0(_mobius_add(h_hyp, p_hyp, c), c)


def _san_layer_kernel(h_ref, hT_ref, e_ref, mask_ref,
                      wq_ref, wkt_ref, wv_ref, wo_ref, bo_ref,
                      ln1g_ref, ln1b_ref, wf1_ref, bf1_ref, wf2_ref, bf2_ref,
                      ln2g_ref, ln2b_ref, o_ref,
                      *, n_heads, d_head, tile_m, eps):
    # One dst-row tile of one GraphTransformerLayer: SAN attention + O-proj + residual
    # + LN1 + FFN + residual + LN2.
    row0 = pl.multiple_of(pl.program_id(0) * tile_m, tile_m)
    h_full = h_ref[...]                               # [N, D] f32 (src side: K, V)
    h_tile = h_ref[pl.ds(row0, tile_m), :]            # [TM, D] f32 (dst side: Q, residual)
    hT = hT_ref[...]                                  # [D, N] bf16
    mask = mask_ref[...].astype(F32)                  # [TM, N]
    n_src = hT.shape[1]
    scale = 1.0 / math.sqrt(d_head)

    h_tile_bf = h_tile.astype(BF16)
    h_full_bf = h_full.astype(BF16)

    # TODO(synk): for large graphs, precompute K/V once per layer instead of per dst tile,
    # and switch to a sparse (scalar-prefetch, real-edge) formulation instead of dense NxN.
    head_outs = []
    for hh in range(n_heads):
        qh = _mm(h_tile_bf, wq_ref[hh])               # [TM, dh]
        kTh = _mm(wkt_ref[hh], hT)                    # [dh, N]  (src on lanes)
        vh = _mm(h_full_bf, wv_ref[hh])               # [N, dh]
        # Lane-dense score accumulation: score[j,i] = sum_d q[j,d] * k[i,d] * E[h,d,j,i]
        score = jnp.zeros((tile_m, n_src), F32)
        for d in range(d_head):
            e_slab = e_ref[hh * d_head + d].astype(F32)        # [TM, N] lane-dense
            score = score + (qh[:, d:d + 1] * e_slab) * kTh[d:d + 1, :]
        s = jnp.exp(jnp.clip(score * scale, -5.0, 5.0)) * mask  # SAN clamp(-5,5) softmax
        z = jnp.sum(s, axis=1, keepdims=True)                   # [TM, 1]
        wv = _mm(s, vh)                                          # [TM, dh]
        head_outs.append(wv * pl.reciprocal(z + 1e-6, approx=True))
    attn = jnp.concatenate(head_outs, axis=-1)                   # [TM, H*dh]

    # O projection + residual + LN1
    h1 = h_tile + _mm(attn, wo_ref[...]) + bo_ref[...]
    h1 = _layernorm(h1, ln1g_ref[...], ln1b_ref[...], eps)
    # FFN + residual + LN2
    f = jnp.maximum(_mm(h1, wf1_ref[...]) + bf1_ref[...], 0.0)
    f = _mm(f, wf2_ref[...]) + bf2_ref[...]
    o_ref[...] = _layernorm(h1 + f, ln2g_ref[...], ln2b_ref[...], eps)


def _readout_pred_kernel(pool_ref, h_ref, w_ref, b_ref, o_ref):
    # mean readout (pool @ h) + all prediction heads (weights concatenated on lanes)
    hg = jnp.dot(pool_ref[...], h_ref[...], preferred_element_type=F32)
    o_ref[...] = jnp.dot(hg, w_ref[...], preferred_element_type=F32) + b_ref[...]


# ----------------------------------------------------------------------------
# pallas_call wrappers
# ----------------------------------------------------------------------------

def _call_full_vmem(kernel, out_shape, *args):
    return pl.pallas_call(
        kernel,
        out_shape=out_shape,
        in_specs=[pl.BlockSpec(memory_space=pltpu.MemorySpace.VMEM)] * len(args),
        out_specs=pl.BlockSpec(memory_space=pltpu.MemorySpace.VMEM),
    )(*args)


def pallas_edge_prep(edge_attr, w_e, b_e, we_all):
    E = edge_attr.shape[0]
    return _call_full_vmem(
        _edge_prep_kernel,
        jax.ShapeDtypeStruct((E, we_all.shape[1]), F32),
        edge_attr, w_e, b_e.reshape(1, -1), we_all)


def pallas_pe_chain(pos_enc, h, adj_norm, w_p, b_p, w_pe, b_pe, c):
    kern = functools.partial(_pe_chain_kernel, c=c)
    return _call_full_vmem(
        kern, jax.ShapeDtypeStruct(h.shape, F32),
        pos_enc, h, adj_norm, w_p, b_p.reshape(1, -1), w_pe, b_pe.reshape(1, -1))


def _full_spec(arr):
    nd = arr.ndim
    return pl.BlockSpec(arr.shape, lambda t, _nd=nd: (0,) * _nd)


def pallas_san_layer(h, hT, eprojT_st, maskT, lw, li, n_heads, d_head, tile_m, eps=1e-5):
    N_pad, D = h.shape
    assert N_pad % tile_m == 0
    n_tiles = N_pad // tile_m
    Hd = n_heads * d_head

    kern = functools.partial(_san_layer_kernel, n_heads=n_heads, d_head=d_head,
                             tile_m=tile_m, eps=eps)
    weights = [lw["WQh"], lw["WKT"], lw["WVh"], lw["WO"], lw["bO"],
               lw["ln1_g"], lw["ln1_b"], lw["W_ffn1"], lw["b_ffn1"],
               lw["W_ffn2"], lw["b_ffn2"], lw["ln2_g"], lw["ln2_b"]]
    in_specs = [
        pl.BlockSpec((N_pad, D), lambda t: (0, 0)),                       # h (full, resident)
        pl.BlockSpec((D, N_pad), lambda t: (0, 0)),                       # h^T (full, bf16)
        pl.BlockSpec((Hd, tile_m, N_pad), lambda t, _li=li: (_li, t, 0)),  # E chunk (layer li)
        pl.BlockSpec((tile_m, N_pad), lambda t: (t, 0)),                   # edge mask (bf16)
    ] + [_full_spec(w) for w in weights]

    return pl.pallas_call(
        kern,
        out_shape=jax.ShapeDtypeStruct((N_pad, D), F32),
        grid=(n_tiles,),
        in_specs=in_specs,
        out_specs=pl.BlockSpec((tile_m, D), lambda t: (t, 0)),
        compiler_params=pltpu.CompilerParams(
            dimension_semantics=("parallel",),            # megacore on v7x, no-op on v5e/v6e
            vmem_limit_bytes=32 * 1024 * 1024),
    )(h, hT, eprojT_st, maskT, *weights)


def pallas_readout_pred(pool, h, w_all, b_all):
    B = pool.shape[0]
    return _call_full_vmem(
        _readout_pred_kernel,
        jax.ShapeDtypeStruct((B, w_all.shape[1]), F32),
        pool, h, w_all, b_all)


# ----------------------------------------------------------------------------
# Model glue
# ----------------------------------------------------------------------------

CFG = dict(
    full_graph=False, gamma=1e-5, GT_layers=2, GT_hidden_dim=32, GT_out_dim=32,
    GT_n_heads=4, residual=True, readout="mean", layer_norm=True, batch_norm=False,
    c=1.0, pe_layers=1, manifold="Poincare", model="HNN", pe_dim=8, emb_dim=32,
    num_vocab=10, max_seq_len=3, num_nodetypes=20, num_nodeattributes=30, max_depth=10,
)


def init_params(key, cfg):
    D = cfg["GT_hidden_dim"]
    Dout = cfg["GT_out_dim"]

    def nxt():
        nonlocal key
        key, sub = jax.random.split(key)
        return sub

    def glorot(shape):
        lim = math.sqrt(6.0 / (shape[0] + shape[1]))
        return jax.random.uniform(nxt(), shape, F32, -lim, lim)

    params = dict(
        type_emb=jax.random.normal(nxt(), (cfg["num_nodetypes"], D)) * 0.1,
        attr_emb=jax.random.normal(nxt(), (cfg["num_nodeattributes"], D)) * 0.1,
        depth_emb=jax.random.normal(nxt(), (cfg["max_depth"] + 1, D)) * 0.1,
        W_e=glorot((2, cfg["emb_dim"])), b_e=jnp.zeros((cfg["emb_dim"],)),
        W_p=glorot((cfg["pe_dim"], D)), b_p=jnp.zeros((D,)),
        W_pe=glorot((D, D)), b_pe=jnp.zeros((D,)),
        layers=[],
        pred=[],
    )
    for _ in range(cfg["GT_layers"]):
        params["layers"].append(dict(
            WQ=glorot((D, Dout)), WK=glorot((D, Dout)), WV=glorot((D, Dout)), WE=glorot((D, Dout)),
            WO=glorot((Dout, Dout)), bO=jnp.zeros((Dout,)),
            ln1_g=jnp.ones((Dout,)), ln1_b=jnp.zeros((Dout,)),
            W_ffn1=glorot((Dout, 2 * Dout)), b_ffn1=jnp.zeros((2 * Dout,)),
            W_ffn2=glorot((2 * Dout, Dout)), b_ffn2=jnp.zeros((Dout,)),
            ln2_g=jnp.ones((Dout,)), ln2_b=jnp.zeros((Dout,)),
        ))
    for _ in range(cfg["max_seq_len"]):
        params["pred"].append(dict(W=glorot((cfg["emb_dim"], cfg["num_vocab"])),
                                   b=jnp.zeros((cfg["num_vocab"],))))
    return params


def _prep_layer_weights(lp, H, dh):
    """Head-major weight layout + bf16 pre-cast (done once in the wrapper)."""
    D = lp["WQ"].shape[0]
    return dict(
        WQh=lp["WQ"].reshape(D, H, dh).transpose(1, 0, 2).astype(BF16),   # [H, D, dh]
        WKT=lp["WK"].reshape(D, H, dh).transpose(1, 2, 0).astype(BF16),   # [H, dh, D]
        WVh=lp["WV"].reshape(D, H, dh).transpose(1, 0, 2).astype(BF16),   # [H, D, dh]
        WO=lp["WO"].astype(BF16), bO=lp["bO"].reshape(1, -1).astype(F32),
        ln1_g=lp["ln1_g"].reshape(1, -1).astype(F32),
        ln1_b=lp["ln1_b"].reshape(1, -1).astype(F32),
        W_ffn1=lp["W_ffn1"].astype(BF16), b_ffn1=lp["b_ffn1"].reshape(1, -1).astype(F32),
        W_ffn2=lp["W_ffn2"].astype(BF16), b_ffn2=lp["b_ffn2"].reshape(1, -1).astype(F32),
        ln2_g=lp["ln2_g"].reshape(1, -1).astype(F32),
        ln2_b=lp["ln2_b"].reshape(1, -1).astype(F32),
    )


def graph_transformer_forward(params, cfg, node_feat, node_depth, edge_index, edge_attr,
                              pos_enc, batch, num_graphs, tile_m=64):
    N = node_feat.shape[0]
    N_pad = ((N + 127) // 128) * 128          # lane-dense src/dst axes
    src, dst = edge_index[0], edge_index[1]
    H = cfg["GT_n_heads"]
    Hd = cfg["GT_out_dim"]
    dh = Hd // H
    L = cfg["GT_layers"]
    tile_m = min(tile_m, N_pad)

    # node_encoder (ASTNodeEncoder): embedding gathers — glue in plain JAX.
    depth = jnp.minimum(node_depth, cfg["max_depth"])
    h = (params["type_emb"][node_feat[:, 0]]
         + params["attr_emb"][node_feat[:, 1]]
         + params["depth_emb"][depth]).astype(F32)
    h = jnp.pad(h, ((0, N_pad - N), (0, 0)))
    pos_enc_p = jnp.pad(pos_enc.astype(F32), ((0, N_pad - N), (0, 0)))
    # in_feat_dropout: identity at inference.

    # One kernel: embedding_e + every layer's E-projection (concatenated WE, bf16).
    WE_all = jnp.concatenate([lp["WE"] for lp in params["layers"]], axis=1).astype(BF16)
    eproj_all = pallas_edge_prep(edge_attr.astype(F32), params["W_e"],
                                 params["b_e"], WE_all)                   # [E, L*Hd] f32

    # Dense dst-major per-edge tensors (glue). Duplicate edges overwrite (not accumulate).
    # TODO(synk): replace with a sparse scalar-prefetch edge formulation for large graphs
    # (dense NxN grows quadratically and would not fit v7x's 64 MiB VMEM at real sizes).
    dense = jnp.zeros((N_pad, N_pad, L * Hd), F32).at[dst, src].set(eproj_all)
    eprojT_st = dense.transpose(2, 0, 1).astype(BF16)                     # [L*H*dh, N, N] bf16
    maskT = jnp.zeros((N_pad, N_pad), BF16).at[dst, src].set(1.0)

    A = jnp.zeros((N_pad, N_pad), F32).at[src, dst].set(1.0) + jnp.eye(N_pad, dtype=F32)
    adj_norm = A / jnp.sum(A, axis=1, keepdims=True)

    # One kernel: whole hyperbolic positional-encoding chain.
    h = pallas_pe_chain(pos_enc_p, h, adj_norm, params["W_p"], params["b_p"],
                        params["W_pe"], params["b_pe"], cfg["c"])

    # One tiled, megacore-parallel kernel per GraphTransformerLayer (NodeLPE: e untouched).
    for li, lp in enumerate(params["layers"]):
        lw = _prep_layer_weights(lp, H, dh)
        hT = h.T.astype(BF16)                                              # tiny glue transpose
        h = pallas_san_layer(h, hT, eprojT_st, maskT, lw, li, H, dh, tile_m)

    # One kernel: mean readout + all max_seq_len prediction heads.
    pool = (jnp.arange(num_graphs)[:, None] == batch[None, :]).astype(F32)
    pool = pool / jnp.maximum(jnp.sum(pool, axis=1, keepdims=True), 1.0)
    pool = jnp.pad(pool, ((0, 0), (0, N_pad - N)))
    W_all = jnp.concatenate([p["W"] for p in params["pred"]], axis=1)
    b_all = jnp.concatenate([p["b"] for p in params["pred"]], axis=0).reshape(1, -1)
    out_all = pallas_readout_pred(pool, h, W_all, b_all)                   # [B, S*V]

    V = cfg["num_vocab"]
    return [out_all[:, i * V:(i + 1) * V] for i in range(cfg["max_seq_len"])]


# ----------------------------------------------------------------------------
# Example run
# ----------------------------------------------------------------------------

if __name__ == "__main__":
    key = jax.random.PRNGKey(0)
    cfg = CFG
    params = init_params(key, cfg)

    N = 16          # nodes (2 graphs x 8 nodes)
    key, k1, k2, k3, k4 = jax.random.split(key, 5)
    node_feat = jnp.stack([
        jax.random.randint(k1, (N,), 0, cfg["num_nodetypes"]),
        jax.random.randint(k2, (N,), 0, cfg["num_nodeattributes"]),
    ], axis=1)
    node_depth = jax.random.randint(k3, (N,), 0, 14)   # exercises depth clamping

    # ring + skip edges inside each of the two 8-node graphs -> 32 directed edges
    base = jnp.arange(8)
    src = jnp.concatenate([base, base, base + 8, base + 8])
    dst = jnp.concatenate([(base + 1) % 8, (base + 2) % 8,
                           (base + 1) % 8 + 8, (base + 2) % 8 + 8])
    edge_index = jnp.stack([src, dst], axis=0)

    edge_attr = jax.random.normal(k4, (edge_index.shape[1], 2), F32)
    pos_enc = jax.random.normal(jax.random.PRNGKey(7), (N, cfg["pe_dim"]), F32) * 0.1
    batch = jnp.concatenate([jnp.zeros((8,), jnp.int32), jnp.ones((8,), jnp.int32)])

    preds = graph_transformer_forward(params, cfg, node_feat, node_depth, edge_index,
                                      edge_attr, pos_enc, batch, num_graphs=2, tile_m=64)
    out = jax.block_until_ready(jnp.stack(preds))   # [max_seq_len, num_graphs, num_vocab]
    assert out.shape == (cfg["max_seq_len"], 2, cfg["num_vocab"])
    assert bool(jnp.all(jnp.isfinite(out)))
    print("KERNEL_OK")
</pallas_src>

<mosaic_0001>
module attributes {stable_mosaic.version = 11 : i64} {
  func.func @_edge_prep_kernel(%arg0: memref<32x2xf32, #tpu.memory_space<vmem>>, %arg1: memref<2x32xf32, #tpu.memory_space<vmem>>, %arg2: memref<1x32xf32, #tpu.memory_space<vmem>>, %arg3: memref<32x64xbf16, #tpu.memory_space<vmem>>, %arg4: memref<32x64xf32, #tpu.memory_space<vmem>>) attributes {dimension_semantics = [], scalar_prefetch = 0 : i64, scratch_operands = 0 : i64, tpu.core_type = #tpu.core_type<tc>} {
    %c0 = arith.constant 0 : index
    %c0_0 = arith.constant 0 : index
    %0 = vector.load %arg0[%c0, %c0_0] : memref<32x2xf32, #tpu.memory_space<vmem>>, vector<32x2xf32>
    %c0_1 = arith.constant 0 : index
    %c0_2 = arith.constant 0 : index
    %1 = vector.load %arg1[%c0_1, %c0_2] : memref<2x32xf32, #tpu.memory_space<vmem>>, vector<2x32xf32>
    %cst = arith.constant dense<0.000000e+00> : vector<32x32xf32>
    %2 = tpu.matmul %0, %1, %cst {dimension_numbers = #tpu.dot_dimension_numbers<[1], [0], [0], [1], [0, 0, 1, 1], [], []>} : vector<32x2xf32>, vector<2x32xf32>, vector<32x32xf32> -> vector<32x32xf32>
    %c0_3 = arith.constant 0 : index
    %c0_4 = arith.constant 0 : index
    %3 = vector.load %arg2[%c0_3, %c0_4] : memref<1x32xf32, #tpu.memory_space<vmem>>, vector<1x32xf32>
    %4 = vector.broadcast %3 : vector<1x32xf32> to vector<32x32xf32>
    %5 = arith.addf %2, %4 : vector<32x32xf32>
    %c0_5 = arith.constant 0 : index
    %c0_6 = arith.constant 0 : index
    %6 = vector.load %arg3[%c0_5, %c0_6] : memref<32x64xbf16, #tpu.memory_space<vmem>>, vector<32x64xbf16>
    %7 = arith.truncf %5 : vector<32x32xf32> to vector<32x32xbf16>
    %cst_7 = arith.constant dense<0.000000e+00> : vector<32x64xf32>
    %8 = tpu.matmul %7, %6, %cst_7 {dimension_numbers = #tpu.dot_dimension_numbers<[1], [0], [0], [1], [0, 0, 1, 1], [], []>} : vector<32x32xbf16>, vector<32x64xbf16>, vector<32x64xf32> -> vector<32x64xf32>
    %c0_8 = arith.constant 0 : index
    %c0_9 = arith.constant 0 : index
    %9 = vector.load %arg4[%c0_8, %c0_9] : memref<32x64xf32, #tpu.memory_space<vmem>>, vector<32x64xf32>
    tpu.vector_store %arg4[%c0_8, %c0_9], %8 {strides = array<i32>} : memref<32x64xf32, #tpu.memory_space<vmem>>, vector<32x64xf32>,
    return
  }
}

</mosaic_0001>

<bundles_post_ra>
// kernel: tpu_custom_call.1
= control target key start
LH: loop header
LB: loop body
LE: loop exit
PB: predicated region body
PF: predicated region fallthrough
CT: control target
= control target key end

     0   :  { %vm44_vm0 = vcmask 1041408   ;;  %vm31_vm1 = vcmask 15360   ;;  %s356_s0 = inlined_call_operand.vmem [shape: f32[32,2], index: 0, kind: input, shape index: {}]   ;;  %s357_s1 = inlined_call_operand.vmem [shape: f32[2,32], index: 1, kind: input, shape index: {}]   ;;  %s358_s2 = inlined_call_operand.vmem [shape: f32[1,32], index: 2, kind: input, shape index: {}]   ;;  %s359_s3 = inlined_call_operand.vmem [shape: bf16[32,64], index: 3, kind: input, shape index: {}]   ;;  %s360_s4 = inlined_call_operand.hbm [shape: f32[32,64], index: 4, kind: output, shape index: {}]  }
   0x1   :  { %v23_v0 = vld [vmem:[%s357_s1] sm:$0x3]  ;;  %v20_v2 = vld [vmem:[%s356_s0 + $0x8] sm:$0xff]  ;;  %v21_v3 = vld [vmem:[%s356_s0 + $0x10] sm:$0xff] }
   0x2   :  { %v19_v1 = vld [vmem:[%s356_s0] sm:$0xff]  ;;  %247 = vmatprep.subr.msk.mxu0 %vm44_vm0, %v23_v0 }
   0x3   :  { %249 = vmatprep.mubr.msk.f32.mxu0 %vm31_vm1, %v19_v1  ;;  %248 = vmatpush3.msk.msra.mxu0 %vm44_vm0, %v23_v0 }
   0x4   :  { %250 = vmatmul.mubr.msk.f32.vlgmr.msra.gmra.mrb[0].mxu0 %vm31_vm1, %v20_v2 }
   0x5   :  { %9 = vsyncpa [#allocation3], 0  ;;  %252 = vmatprep.mubr.msk.f32.mxu0 %vm31_vm1, %v21_v3  ;;  %v22_v4 = vld [vmem:[%s356_s0 + $0x18] sm:$0xff]  ;;  %v266_v5 = vld [vmem:[%s359_s3] sm:$0xff]   ;;  %vm151_vm2 = vcmask 261120   ;;  %vm207_vm3 = vcmask 523264  }
   0x6   :  { %255 = vmatprep.subr.bf16.mxu1 %v266_v5  ;;  %v267_v6 = vld [vmem:[%s359_s3 + $0x8] sm:$0xff]   ;;  %v228_v7 = vld [vmem:[%s358_s2] ss:$0 sm:$0xff]  ;;  %s292_s0 = smov [#allocation2]  }
   0x7   :  { %256 = vmatpush3.bf16.msra.mxu1 %v266_v5  ;;  %s217_s3 = sshll.u32 %s292_s0, 4  ;;  %s218_s3 = int_to_ptr.vmem [resolvable:$true] %s217_s3 }
   0x8   :  { %253 = vmatmul.mubr.msk.f32.gmra.mrb[2].mxu0 %vm31_vm1, %v22_v4  ;;  %257 = vmatprep.subr.bf16.mxu1 %v267_v6  ;;  %s268_s2 = scalar_lea.vmem %s218_s3, 512  ;;  %p273_p1 = scmp.lt.s32.totalorder %s218_s3, %s218_s3 }
   0x9   :  { %p269_p0 = scmp.ne.s32.totalorder %s218_s3, %s268_s2  ;;  %p274_p2 = scmp.lt.s32.totalorder %s268_s2, %s268_s2 }
   0xb   :  { %258 = vmatpush3.bf16.msra.mxu1 %v267_v6  ;;  %p275_p3 = por %p274_p2, %p273_p1 }
   0xd   :  { %p276_p4 = pnand %p275_p3, %p269_p0 }
  0xd7   :  { %v251_v8 = vpop.f32.mrb[0].mxu0 }
  0xd8   :  { %v120_v9 = vadd.f32 %v251_v8, %v228_v7  ;;  %v114_v10 = vpop.f32.mrb[1].mxu0 }
  0xd9   :  { %v115_v11 = vadd.f32 %v228_v7, %v114_v10 }
  0xdb   :  { %v254_v12 = vpop.f32.mrb[2].mxu0  ;;  %v137_v13 = vpack.c.bf16 %v120_v9, %v115_v11 }
  0xdc   :  { %v130_v14 = vadd.f32 %v254_v12, %v228_v7  ;;  %v124_v15 = vpop.f32.mrb[3].mxu0 }
  0xdd   :  { %v125_v16 = vadd.f32 %v228_v7, %v124_v15  ;;  %259 = vmatprep.mubr.msk.bf16.mxu1 %vm151_vm2, %v137_v13 }
  0xdf   :  { %v138_v17 = vpack.c.bf16 %v130_v14, %v125_v16 }
  0xe1   :  { %260 = vmatmul.mubr.msk.bf16.vlgmr.msra.gmra.mrb[0].mxu1 %vm151_vm2, %v138_v17 }
 0x1b4   :  { %v261_v18 = vpop.f32.mrb[0].mxu1 }
 0x1b5   :  { %210 = vst.msk [vmem:[#allocation2 + $0x10] sm:$0xff] %vm207_vm3, %v261_v18  ;;  %v192_v19 = vpop.f32.mrb[1].mxu1 }
 0x1b6   :  { %208 = vst.msk [vmem:[#allocation2] sm:$0xff] %vm207_vm3, %v192_v19  ;;  %v262_v20 = vpop.f32.mrb[2].mxu1 }
 0x1b7   :  { %211 = vst.msk [vmem:[#allocation2 + $0x18] sm:$0xff] %vm207_vm3, %v262_v20  ;;  %v195_v21 = vpop.f32.mrb[3].mxu1 }
 0x1b8   :  { %209 = vst.msk [vmem:[#allocation2 + $0x8] sm:$0xff] %vm207_vm3, %v195_v21 }
 0x1b9   :  { %279 = shalt.err (!%p276_p4)
}
 0x1ba   :  { %s280_s6 = scalar_lea.hbm %s360_s4, 512 }
 0x1bb   :  { %p281_p5 = scmp.ne.s32.totalorder %s360_s4, %s280_s6  ;;  %p284_p6 = scmp.lt.u32.totalorder %s280_s6, %s360_s4 }
 0x1bd   :  { %p286_p7 = pnand %p284_p6, %p281_p5 }
 0x1bf   :  { %289 = shalt.err (!%p286_p7)
}
 0x1c0   :  { %s293_s11 = smov 128   ;;  %s294_s12 = smov 8  }
 0x1c1   :  { %223 = dma.vmem_to_hbm [thread:$0]  %s218_s3, 512, %s360_s4, [#allocation3], %s293_s11, %s293_s11, %s294_s12  }
 0x1c2   :  { %290 = dma.done.wait [#allocation3], 512  }
 0x1c3   :  { %291 = vsyncadd [#allocation3], 4294966784 }
 0x1c4   :  { %227 = vsyncpa [#allocation3], 1 }

</bundles_post_ra>
